<compile_context>
chip_gen: v7x
topology: tpu7x:2x2x1
jax: 0.10.0
libtpu: 0.0.40
codegen_flags: <defaults>
</compile_context>

<pallas_src>
import math
import functools

import jax
import jax.numpy as jnp
from jax import lax
from jax.experimental import pallas as pl
from jax.experimental.pallas import tpu as pltpu


VMEM = pl.BlockSpec(memory_space=pltpu.MemorySpace.VMEM)
SMEM = pl.BlockSpec(memory_space=pltpu.MemorySpace.SMEM)


# ----------------------------- Pallas kernels -----------------------------
def _linear_dual_kernel(x1_ref, x2_ref, w_ref, b_ref, o1_ref, o2_ref, *, act):
    # One weight, two views: halves kernel launches for shared-weight linears.
    w = w_ref[...]
    b = b_ref[...]
    for x_ref, o_ref in ((x1_ref, o1_ref), (x2_ref, o2_ref)):
        y = jnp.dot(x_ref[...], w, preferred_element_type=jnp.float32) + b
        if act == "tanh":
            y = jnp.tanh(y)
        o_ref[...] = y


def linear_dual_pallas(x1, x2, w, b, act="none"):
    n_out = w.shape[1]
    return pl.pallas_call(
        functools.partial(_linear_dual_kernel, act=act),
        out_shape=(jax.ShapeDtypeStruct((x1.shape[0], n_out), jnp.float32),
                   jax.ShapeDtypeStruct((x2.shape[0], n_out), jnp.float32)),
        in_specs=[VMEM] * 4,
        out_specs=(VMEM, VMEM),
    )(x1, x2, w, b)


def _adapt_dual_kernel(x1_ref, x2_ref, w_ref, b_ref, o1_ref, o2_ref, *, eps):
    # Fused: Linear -> tanh -> BatchNorm1d(affine=False, batch stats), per view.
    w = w_ref[...]
    b = b_ref[...]
    for x_ref, o_ref in ((x1_ref, o1_ref), (x2_ref, o2_ref)):
        y = jnp.tanh(jnp.dot(x_ref[...], w, preferred_element_type=jnp.float32) + b)
        m = jnp.mean(y, axis=0, keepdims=True)
        v = jnp.mean((y - m) * (y - m), axis=0, keepdims=True)
        o_ref[...] = (y - m) * lax.rsqrt(v + eps)


def adapt_dual_pallas(x1, x2, w, b, eps=1e-5):
    n_out = w.shape[1]
    return pl.pallas_call(
        functools.partial(_adapt_dual_kernel, eps=eps),
        out_shape=(jax.ShapeDtypeStruct((x1.shape[0], n_out), jnp.float32),
                   jax.ShapeDtypeStruct((x2.shape[0], n_out), jnp.float32)),
        in_specs=[VMEM] * 4,
        out_specs=(VMEM, VMEM),
    )(x1, x2, w, b)


def _mlp2_kernel(x_ref, w1_ref, b1_ref, w2_ref, b2_ref, o_ref):
    h = jnp.tanh(jnp.dot(x_ref[...], w1_ref[...],
                         preferred_element_type=jnp.float32) + b1_ref[...])
    o_ref[...] = jnp.tanh(jnp.dot(h, w2_ref[...],
                                  preferred_element_type=jnp.float32) + b2_ref[...])


def mlp2_pallas(x, w1, b1, w2, b2):
    return pl.pallas_call(
        _mlp2_kernel,
        out_shape=jax.ShapeDtypeStruct((x.shape[0], w2.shape[1]), jnp.float32),
        in_specs=[VMEM] * 5,
        out_specs=VMEM,
    )(x, w1, b1, w2, b2)


def _mlp2_dual_kernel(x1_ref, x2_ref, w1_ref, b1_ref, w2_ref, b2_ref, o1_ref, o2_ref):
    w1 = w1_ref[...]; b1 = b1_ref[...]
    w2 = w2_ref[...]; b2 = b2_ref[...]
    for x_ref, o_ref in ((x1_ref, o1_ref), (x2_ref, o2_ref)):
        h = jnp.tanh(jnp.dot(x_ref[...], w1, preferred_element_type=jnp.float32) + b1)
        o_ref[...] = jnp.tanh(jnp.dot(h, w2, preferred_element_type=jnp.float32) + b2)


def mlp2_dual_pallas(x1, x2, w1, b1, w2, b2):
    n_out = w2.shape[1]
    return pl.pallas_call(
        _mlp2_dual_kernel,
        out_shape=(jax.ShapeDtypeStruct((x1.shape[0], n_out), jnp.float32),
                   jax.ShapeDtypeStruct((x2.shape[0], n_out), jnp.float32)),
        in_specs=[VMEM] * 6,
        out_specs=(VMEM, VMEM),
    )(x1, x2, w1, b1, w2, b2)


def _hgt_attn_dual_kernel(q1_ref, kv1_ref, q2_ref, kv2_ref, bias_ref,
                          o1_ref, o2_ref, *, n_heads, d_k):
    # Node-major attention, both views share the (precomputed additive) mask.
    # q is already scaled by relation_pri/sqrt(d_k); k/v are already folded with
    # relation_att/relation_msg — only scores/softmax/value-mix remain here.
    n_hid = n_heads * d_k
    bias = bias_ref[...]                       # (Nd, Ns): 0 on edges, -1e30 off
    for q_ref, kv_ref, o_ref in ((q1_ref, kv1_ref, o1_ref), (q2_ref, kv2_ref, o2_ref)):
        q = q_ref[...]                         # (Nd, n_hid)
        kv = kv_ref[...]                       # (Ns, 2*n_hid)  [K | V]
        outs = []
        for h in range(n_heads):               # static unroll, H is tiny
            lo, hi = h * d_k, (h + 1) * d_k
            qh = q[:, lo:hi]
            kh = kv[:, lo:hi]
            vh = kv[:, n_hid + lo:n_hid + hi]
            s = lax.dot_general(qh, kh, (((1,), (1,)), ((), ())),
                                preferred_element_type=jnp.float32) + bias
            m = jnp.max(s, axis=-1, keepdims=True)
            p = jnp.exp(s - m)
            att = p * pl.reciprocal(jnp.sum(p, axis=-1, keepdims=True), approx=True)
            outs.append(jnp.dot(att, vh, preferred_element_type=jnp.float32))
        o_ref[...] = jnp.concatenate(outs, axis=1)   # one dense node-major store


def hgt_attention_dual_pallas(q1, kv1, q2, kv2, bias, n_heads, d_k):
    n_hid = n_heads * d_k
    return pl.pallas_call(
        functools.partial(_hgt_attn_dual_kernel, n_heads=n_heads, d_k=d_k),
        out_shape=(jax.ShapeDtypeStruct((q1.shape[0], n_hid), jnp.float32),
                   jax.ShapeDtypeStruct((q2.shape[0], n_hid), jnp.float32)),
        in_specs=[VMEM] * 5,
        out_specs=(VMEM, VMEM),
    )(q1, kv1, q2, kv2, bias)


def _a_skip_dual_kernel(t1_ref, h1_ref, t2_ref, h2_ref, w_ref, b_ref, alpha_ref,
                        o1_ref, o2_ref):
    # Fused epilogue: a_linear(t) * alpha + h * (1 - alpha), both views.
    w = w_ref[...]
    b = b_ref[...]
    alpha = alpha_ref[0, 0]
    for t_ref, h_ref, o_ref in ((t1_ref, h1_ref, o1_ref), (t2_ref, h2_ref, o2_ref)):
        y = jnp.dot(t_ref[...], w, preferred_element_type=jnp.float32) + b
        o_ref[...] = y * alpha + h_ref[...] * (1.0 - alpha)


def a_skip_dual_pallas(t1, h1, t2, h2, w, b, alpha):
    return pl.pallas_call(
        _a_skip_dual_kernel,
        out_shape=(jax.ShapeDtypeStruct(h1.shape, jnp.float32),
                   jax.ShapeDtypeStruct(h2.shape, jnp.float32)),
        in_specs=[VMEM] * 6 + [SMEM],
        out_specs=(VMEM, VMEM),
    )(t1, h1, t2, h2, w, b, alpha)


def _whiten_prep_kernel(x_ref, xn_ref, cov_ref, *, inv_nm1):
    # Fused: F.normalize -> center -> X^T X (contract rows, no XLA transpose).
    x = x_ref[...]
    inv_norm = lax.rsqrt(jnp.maximum(jnp.sum(x * x, axis=1, keepdims=True), 1e-24))
    xn = x * inv_norm
    xn = xn - jnp.mean(xn, axis=0, keepdims=True)
    xn_ref[...] = xn
    cov_ref[...] = lax.dot_general(xn, xn, (((0,), (0,)), ((), ())),
                                   preferred_element_type=jnp.float32) * inv_nm1


def _matmul_nt_kernel(a_ref, b_ref, o_ref):
    # a @ b.T without materializing b.T in HBM.
    o_ref[...] = lax.dot_general(a_ref[...], b_ref[...], (((1,), (1,)), ((), ())),
                                 preferred_element_type=jnp.float32)


def matmul_nt_pallas(a, b):
    return pl.pallas_call(
        _matmul_nt_kernel,
        out_shape=jax.ShapeDtypeStruct((a.shape[0], b.shape[0]), jnp.float32),
        in_specs=[VMEM] * 2,
        out_specs=VMEM,
    )(a, b)


def _consistency_kernel(z1_ref, z2_ref, c_ref, inv_ref, *, inv_n):
    # Fused: invariance term sum((z1-z2)^2)/n and cross-correlation z1^T z2 / n.
    z1 = z1_ref[...]
    z2 = z2_ref[...]
    d = z1 - z2
    inv_ref[...] = jnp.sum(d * d, keepdims=True) * inv_n
    c_ref[...] = lax.dot_general(z1, z2, (((0,), (0,)), ((), ())),
                                 preferred_element_type=jnp.float32) * inv_n


# ------------------------------ JAX glue ops -------------------------------
def whitening(x, eps=0.01):
    n, d = x.shape
    xn, cov = pl.pallas_call(
        functools.partial(_whiten_prep_kernel, inv_nm1=1.0 / (n - 1)),
        out_shape=(jax.ShapeDtypeStruct((n, d), jnp.float32),
                   jax.ShapeDtypeStruct((d, d), jnp.float32)),
        in_specs=[VMEM],
        out_specs=(VMEM, VMEM),
    )(x)
    cov_shrink = (1.0 - eps) * cov + eps * jnp.eye(d, dtype=jnp.float32)
    chol = jnp.linalg.cholesky(cov_shrink)
    inv_sqrt = jax.scipy.linalg.solve_triangular(chol, jnp.eye(d, dtype=jnp.float32),
                                                 lower=True)
    return matmul_nt_pallas(xn, inv_sqrt)      # == (inv_sqrt @ xn.T).T == xn @ inv_sqrt.T


def consistency_loss(z1, z2, alpha):
    # TODO(synk): consistency_loss is not defined in the reference source; using an
    # invariance (MSE) + cross-correlation decorrelation surrogate.
    n, d = z1.shape
    c, inv = pl.pallas_call(
        functools.partial(_consistency_kernel, inv_n=1.0 / n),
        out_shape=(jax.ShapeDtypeStruct((d, d), jnp.float32),
                   jax.ShapeDtypeStruct((1, 1), jnp.float32)),
        in_specs=[VMEM] * 2,
        out_specs=(VMEM, VMEM),
    )(z1, z2)
    dec = jnp.sum((c - jnp.eye(d, dtype=jnp.float32)) ** 2)
    return alpha * inv[0, 0] + (1.0 - alpha) * dec


def mask_attr(rng, x, mask_rate):
    num_nodes = x.shape[0]
    perm = jax.random.permutation(rng, num_nodes)
    num_mask = int(mask_rate * num_nodes)
    num_keep = num_nodes - num_mask
    mask_idx = perm[:num_mask]
    mask_idx2 = perm[num_keep:]
    out1 = x.at[mask_idx].set(0.0)
    out2 = x.at[mask_idx2].set(0.0)
    return out1, out2


# --------------------------- graph + HGT layer ------------------------------
class HeteroGraph:
    def __init__(self, ntypes, node_dict, edge_dict, canonical_etypes, adj):
        self.ntypes = ntypes
        self.node_dict = node_dict
        self.edge_dict = edge_dict
        self.canonical_etypes = canonical_etypes
        self.adj = adj  # etype -> dense (N_dst, N_src) float mask
        # Precompute additive attention bias once (0 on edges, -1e30 off-edges)
        # so the attention kernel does a single add instead of a select.
        self.adj_bias = {e: jnp.where(a > 0.5, 0.0, -1e30).astype(jnp.float32)
                         for e, a in adj.items()}


def prepare_hgt_layer(lp, G, n_heads, d_k, n_hid):
    """Offline weight folding (done once per layer, reused by both views):
       rel_att -> W_k, rel_msg -> W_v (then K|V concatenated lane-dense),
       rel_pri/sqrt(d_k) -> W_q column scales, sigmoid(skip) -> SMEM scalar."""
    scale = 1.0 / math.sqrt(d_k)

    def fold(w, b, rel):
        wf = jnp.einsum('ihc,hcd->ihd', w.reshape(n_hid, n_heads, d_k),
                        rel).reshape(n_hid, n_hid)
        bf = jnp.einsum('ihc,hcd->ihd', b.reshape(1, n_heads, d_k),
                        rel).reshape(1, n_hid)
        return wf, bf

    prep = {"etype": {}, "alpha": {}}
    for (srctype, etype, dsttype) in G.canonical_etypes:
        s_id = G.node_dict[srctype]
        d_id = G.node_dict[dsttype]
        e_id = G.edge_dict[etype]
        wk, bk = fold(lp["k"][s_id]["w"], lp["k"][s_id]["b"], lp["rel_att"][e_id])
        wv, bv = fold(lp["v"][s_id]["w"], lp["v"][s_id]["b"], lp["rel_msg"][e_id])
        col_scale = jnp.repeat(lp["rel_pri"][e_id] * scale, d_k).reshape(1, n_hid)
        prep["etype"][etype] = {
            "wkv": jnp.concatenate([wk, wv], axis=1),   # (n_hid, 2*n_hid)
            "bkv": jnp.concatenate([bk, bv], axis=1),   # (1, 2*n_hid)
            "wq": lp["q"][d_id]["w"] * col_scale,
            "bq": lp["q"][d_id]["b"] * col_scale,
        }
    for ntype in G.ntypes:
        n_id = G.node_dict[ntype]
        prep["alpha"][n_id] = jax.nn.sigmoid(lp["skip"][n_id]).reshape(1, 1)
    return prep


def hgt_layer_forward(lp, prep, G, ndata, key1, key2, n_heads, d_k):
    """One HGT layer applied to BOTH views (they share all weights)."""
    agg1 = {nt: [] for nt in G.ntypes}
    agg2 = {nt: [] for nt in G.ntypes}
    for (srctype, etype, dsttype) in G.canonical_etypes:
        pe = prep["etype"][etype]
        kv1, kv2 = linear_dual_pallas(ndata[srctype][key1], ndata[srctype][key2],
                                      pe["wkv"], pe["bkv"])
        q1, q2 = linear_dual_pallas(ndata[dsttype][key1], ndata[dsttype][key2],
                                    pe["wq"], pe["bq"])
        t1, t2 = hgt_attention_dual_pallas(q1, kv1, q2, kv2,
                                           G.adj_bias[etype], n_heads, d_k)
        agg1[dsttype].append(t1)
        agg2[dsttype].append(t2)

    new1, new2 = {}, {}
    for ntype in G.ntypes:
        n_id = G.node_dict[ntype]
        t1 = agg1[ntype][0]
        t2 = agg2[ntype][0]
        for e1, e2 in zip(agg1[ntype][1:], agg2[ntype][1:]):
            t1 = t1 + e1
            t2 = t2 + e2
        if len(agg1[ntype]) > 1:                 # cross_reducer='mean'
            inv = 1.0 / float(len(agg1[ntype]))
            t1 = t1 * inv
            t2 = t2 * inv
        # TODO(synk): HGTLayer dropout(0.2) treated as identity (eval mode); use_norm=False
        new1[ntype], new2[ntype] = a_skip_dual_pallas(
            t1, ndata[ntype][key1], t2, ndata[ntype][key2],
            lp["a"][n_id]["w"], lp["a"][n_id]["b"], prep["alpha"][n_id])
    for ntype in G.ntypes:
        ndata[ntype][key1] = new1[ntype]
        ndata[ntype][key2] = new2[ntype]


# ------------------------------- parameters ---------------------------------
def init_linear(key, in_dim, out_dim):
    k1, k2 = jax.random.split(key)
    bound = 1.0 / math.sqrt(in_dim)
    w = jax.random.uniform(k1, (in_dim, out_dim), jnp.float32, -bound, bound)
    b = jax.random.uniform(k2, (1, out_dim), jnp.float32, -bound, bound)
    return {"w": w, "b": b}


def xavier_uniform(key, shape):
    receptive = 1
    for s in shape[2:]:
        receptive *= s
    fan_in = shape[1] * receptive
    fan_out = shape[0] * receptive
    bound = math.sqrt(6.0 / (fan_in + fan_out))
    return jax.random.uniform(key, shape, jnp.float32, -bound, bound)


def init_hrcdc_params(key, n_inps, n_hid, n_layers, n_heads, num_types,
                      num_relations, mlp_hidden, mask_key):
    keys = iter(jax.random.split(key, 128))
    d_k = n_hid // n_heads
    params = {}
    params["adapt_ws"] = [init_linear(next(keys), n_inps[t], n_hid) for t in range(num_types)]
    params["crosspros"] = [[init_linear(next(keys), n_hid, n_hid)] for _ in range(num_types)]
    params["gcs"] = []
    for _ in range(n_layers):
        lp = {
            "k": [init_linear(next(keys), n_hid, n_hid) for _ in range(num_types)],
            "q": [init_linear(next(keys), n_hid, n_hid) for _ in range(num_types)],
            "v": [init_linear(next(keys), n_hid, n_hid) for _ in range(num_types)],
            "a": [init_linear(next(keys), n_hid, n_hid) for _ in range(num_types)],
            "rel_pri": jnp.ones((num_relations, n_heads), jnp.float32),
            "rel_att": xavier_uniform(next(keys), (num_relations, n_heads, d_k, d_k)),
            "rel_msg": xavier_uniform(next(keys), (num_relations, n_heads, d_k, d_k)),
            "skip": jnp.ones((num_types,), jnp.float32),
        }
        params["gcs"].append(lp)
    mk = int(mask_key)
    params["feat_map_emb"] = [init_linear(next(keys), n_inps[mk], mlp_hidden),
                              init_linear(next(keys), mlp_hidden, n_hid)]
    params["deco_layers"] = [init_linear(next(keys), n_hid, mlp_hidden),
                             init_linear(next(keys), mlp_hidden, n_inps[mk])]
    params["withinpro"] = [init_linear(next(keys), n_hid, n_hid)]
    return params


# ------------------------------ HRCDC forward --------------------------------
def get_mask_rate(input_mask_rate, istest):
    # TODO(synk): only the float path of get_mask_rate is implemented ('~'/',' string
    # schedules rely on torch RNG / epoch schedules).
    if istest == 1:
        return 0.0
    return float(input_mask_rate)


def hrcdc_forward(params, G, mask_key, target_key, features_list, features_list2,
                  istest, epoch, maskrate, alpha, n_hid, n_layers, n_heads, rng):
    del epoch
    d_k = n_hid // n_heads
    maskrate = get_mask_rate(maskrate, istest)
    mk = int(mask_key)
    feat_maskp, feat_maskp2 = mask_attr(rng, features_list[mk], maskrate)

    feat_mask1, feat_mask2 = [], []
    if mk == 0:
        feat_mask1.append(feat_maskp)
        feat_mask2.append(feat_maskp2)
        for i in range(len(features_list) - 1):
            feat_mask1.append(features_list[i + 1])
            feat_mask2.append(features_list2[i + 1])
    elif mk == 1:
        feat_mask1.append(features_list[0])
        feat_mask2.append(features_list[0])
        feat_mask1.append(feat_maskp)
        feat_mask2.append(feat_maskp2)
        for i in range(len(features_list) - 2):
            feat_mask1.append(features_list[i + 2])
            feat_mask2.append(features_list2[i + 2])

    ndata = {nt: {} for nt in G.ntypes}
    for ntype in G.ntypes:
        ndata[ntype]["inp1"] = feat_mask1[int(ntype)]
        ndata[ntype]["inp2"] = feat_mask2[int(ntype)]

    # adapt linear + tanh + BatchNorm1d fused; both views in one call per type.
    for ntype in G.ntypes:
        n_id = G.node_dict[ntype]
        lin = params["adapt_ws"][n_id]
        h1, h2 = adapt_dual_pallas(ndata[ntype]["inp1"], ndata[ntype]["inp2"],
                                   lin["w"], lin["b"])
        ndata[ntype]["h1"] = h1
        ndata[ntype]["h2"] = h2

    preps = [prepare_hgt_layer(params["gcs"][i], G, n_heads, d_k, n_hid)
             for i in range(n_layers)]
    for i in range(n_layers):
        hgt_layer_forward(params["gcs"][i], preps[i], G, ndata, "h1", "h2", n_heads, d_k)

    emb_mask1 = ndata[mask_key]["h1"]
    emb_mask2 = ndata[mask_key]["h2"]

    fme = params["feat_map_emb"]
    emb_semantic = mlp2_pallas(features_list[mk], fme[0]["w"], fme[0]["b"],
                               fme[1]["w"], fme[1]["b"])
    wp = params["withinpro"][0]
    emb_within1, emb_within2 = linear_dual_pallas(emb_mask1, emb_mask2,
                                                  wp["w"], wp["b"], act="tanh")

    emb_semantic_w = whitening(emb_semantic, eps=0.01)
    emb_within1_w = whitening(emb_within1, eps=0.01)
    emb_within2_w = whitening(emb_within2, eps=0.01)
    losswithin = (consistency_loss(emb_semantic_w, emb_within1_w, alpha)
                  + consistency_loss(emb_semantic_w, emb_within2_w, alpha))

    losscross = 0.0
    for ntype in G.ntypes:
        n_id = G.node_dict[ntype]
        cp = params["crosspros"][n_id][0]
        c1, c2 = linear_dual_pallas(ndata[ntype]["h1"], ndata[ntype]["h2"],
                                    cp["w"], cp["b"], act="tanh")
        losscross = losscross + consistency_loss(whitening(c1), whitening(c2), alpha)

    dl = params["deco_layers"]
    feat_recon1, feat_recon2 = mlp2_dual_pallas(emb_mask1, emb_mask2,
                                                dl[0]["w"], dl[0]["b"],
                                                dl[1]["w"], dl[1]["b"])
    target = features_list[mk]
    loss_recon = (jnp.sum((feat_recon1 - target) ** 2)
                  + jnp.sum((feat_recon2 - target) ** 2))

    embfuse = jnp.concatenate([ndata[target_key]["h1"], ndata[target_key]["h2"]], axis=-1)
    return embfuse, losswithin, losscross, loss_recon


# ----------------------------------- main ------------------------------------
if __name__ == "__main__":
    key = jax.random.PRNGKey(0)
    n_inps = [12, 10]
    num_nodes = [24, 16]
    n_hid, n_layers, n_heads, mlp_hidden = 32, 2, 4, 16
    mask_key, target_key = "0", "1"

    ntypes = ["0", "1"]
    node_dict = {"0": 0, "1": 1}
    edge_dict = {"e01": 0, "e10": 1}
    canonical_etypes = [("0", "e01", "1"), ("1", "e10", "0")]

    def make_adj(nd, ns):
        d = jnp.arange(nd)[:, None]
        s = jnp.arange(ns)[None, :]
        adj = ((d + s) % 3 != 0).astype(jnp.float32)
        return adj.at[:, 0].set(1.0)  # every dst node has >= 1 in-edge

    adj = {"e01": make_adj(num_nodes[1], num_nodes[0]),
           "e10": make_adj(num_nodes[0], num_nodes[1])}
    G = HeteroGraph(ntypes, node_dict, edge_dict, canonical_etypes, adj)

    kf0, kf1, kf2, kf3, kp, km = jax.random.split(key, 6)
    features_list = [jax.random.normal(kf0, (num_nodes[0], n_inps[0]), jnp.float32),
                     jax.random.normal(kf1, (num_nodes[1], n_inps[1]), jnp.float32)]
    features_list2 = [jax.random.normal(kf2, (num_nodes[0], n_inps[0]), jnp.float32),
                      jax.random.normal(kf3, (num_nodes[1], n_inps[1]), jnp.float32)]

    params = init_hrcdc_params(kp, n_inps, n_hid, n_layers, n_heads,
                               len(node_dict), len(edge_dict), mlp_hidden, mask_key)

    embfuse, losswithin, losscross, loss_recon = hrcdc_forward(
        params, G, mask_key, target_key, features_list, features_list2,
        istest=0, epoch=3, maskrate=0.25, alpha=0.5,
        n_hid=n_hid, n_layers=n_layers, n_heads=n_heads, rng=km)

    jax.block_until_ready((embfuse, losswithin, losscross, loss_recon))
    assert embfuse.shape == (num_nodes[1], 2 * n_hid)
    assert jnp.all(jnp.isfinite(embfuse))
    assert jnp.isfinite(losswithin) and jnp.isfinite(losscross) and jnp.isfinite(loss_recon)
    print("KERNEL_OK")
</pallas_src>

<mosaic_0001>
module attributes {stable_mosaic.version = 11 : i64} {
  func.func @_adapt_dual_kernel(%arg0: memref<24x12xf32, #tpu.memory_space<vmem>>, %arg1: memref<24x12xf32, #tpu.memory_space<vmem>>, %arg2: memref<12x32xf32, #tpu.memory_space<vmem>>, %arg3: memref<1x32xf32, #tpu.memory_space<vmem>>, %arg4: memref<24x32xf32, #tpu.memory_space<vmem>>, %arg5: memref<24x32xf32, #tpu.memory_space<vmem>>) attributes {dimension_semantics = [], scalar_prefetch = 0 : i64, scratch_operands = 0 : i64, tpu.core_type = #tpu.core_type<tc>} {
    %c0 = arith.constant 0 : index
    %c0_0 = arith.constant 0 : index
    %0 = vector.load %arg2[%c0, %c0_0] : memref<12x32xf32, #tpu.memory_space<vmem>>, vector<12x32xf32>
    %c0_1 = arith.constant 0 : index
    %c0_2 = arith.constant 0 : index
    %1 = vector.load %arg3[%c0_1, %c0_2] : memref<1x32xf32, #tpu.memory_space<vmem>>, vector<1x32xf32>
    %c0_3 = arith.constant 0 : index
    %c0_4 = arith.constant 0 : index
    %2 = vector.load %arg0[%c0_3, %c0_4] : memref<24x12xf32, #tpu.memory_space<vmem>>, vector<24x12xf32>
    %cst = arith.constant dense<0.000000e+00> : vector<24x32xf32>
    %3 = tpu.matmul %2, %0, %cst {dimension_numbers = #tpu.dot_dimension_numbers<[1], [0], [0], [1], [0, 0, 1, 1], [], []>} : vector<24x12xf32>, vector<12x32xf32>, vector<24x32xf32> -> vector<24x32xf32>
    %4 = vector.broadcast %1 : vector<1x32xf32> to vector<24x32xf32>
    %5 = arith.addf %3, %4 : vector<24x32xf32>
    %6 = math.tanh %5 : vector<24x32xf32>
    %cst_5 = arith.constant dense<0.000000e+00> : vector<32xf32>
    %7 = vector.multi_reduction <add>, %6, %cst_5 [0] : vector<24x32xf32> to vector<32xf32>
    %8 = vector.shape_cast %7 : vector<32xf32> to vector<1x32xf32>
    %cst_6 = arith.constant 2.400000e+01 : f32
    %9 = vector.broadcast %cst_6 : f32 to vector<1x32xf32>
    %10 = arith.divf %8, %9 : vector<1x32xf32>
    %11 = vector.broadcast %10 : vector<1x32xf32> to vector<24x32xf32>
    %12 = arith.subf %6, %11 : vector<24x32xf32>
    %13 = vector.broadcast %10 : vector<1x32xf32> to vector<24x32xf32>
    %14 = arith.subf %6, %13 : vector<24x32xf32>
    %15 = arith.mulf %12, %14 : vector<24x32xf32>
    %cst_7 = arith.constant dense<0.000000e+00> : vector<32xf32>
    %16 = vector.multi_reduction <add>, %15, %cst_7 [0] : vector<24x32xf32> to vector<32xf32>
    %17 = vector.shape_cast %16 : vector<32xf32> to vector<1x32xf32>
    %cst_8 = arith.constant 2.400000e+01 : f32
    %18 = vector.broadcast %cst_8 : f32 to vector<1x32xf32>
    %19 = arith.divf %17, %18 : vector<1x32xf32>
    %20 = vector.broadcast %10 : vector<1x32xf32> to vector<24x32xf32>
    %21 = arith.subf %6, %20 : vector<24x32xf32>
    %cst_9 = arith.constant 9.99999974E-6 : f32
    %22 = vector.broadcast %cst_9 : f32 to vector<1x32xf32>
    %23 = arith.addf %19, %22 : vector<1x32xf32>
    %24 = math.rsqrt %23 : vector<1x32xf32>
    %25 = vector.broadcast %24 : vector<1x32xf32> to vector<24x32xf32>
    %26 = arith.mulf %21, %25 : vector<24x32xf32>
    %c0_10 = arith.constant 0 : index
    %c0_11 = arith.constant 0 : index
    %27 = vector.load %arg4[%c0_10, %c0_11] : memref<24x32xf32, #tpu.memory_space<vmem>>, vector<24x32xf32>
    tpu.vector_store %arg4[%c0_10, %c0_11], %26 {strides = array<i32>} : memref<24x32xf32, #tpu.memory_space<vmem>>, vector<24x32xf32>,
    %c0_12 = arith.constant 0 : index
    %c0_13 = arith.constant 0 : index
    %28 = vector.load %arg1[%c0_12, %c0_13] : memref<24x12xf32, #tpu.memory_space<vmem>>, vector<24x12xf32>
    %cst_14 = arith.constant dense<0.000000e+00> : vector<24x32xf32>
    %29 = tpu.matmul %28, %0, %cst_14 {dimension_numbers = #tpu.dot_dimension_numbers<[1], [0], [0], [1], [0, 0, 1, 1], [], []>} : vector<24x12xf32>, vector<12x32xf32>, vector<24x32xf32> -> vector<24x32xf32>
    %30 = vector.broadcast %1 : vector<1x32xf32> to vector<24x32xf32>
    %31 = arith.addf %29, %30 : vector<24x32xf32>
    %32 = math.tanh %31 : vector<24x32xf32>
    %cst_15 = arith.constant dense<0.000000e+00> : vector<32xf32>
    %33 = vector.multi_reduction <add>, %32, %cst_15 [0] : vector<24x32xf32> to vector<32xf32>
    %34 = vector.shape_cast %33 : vector<32xf32> to vector<1x32xf32>
    %cst_16 = arith.constant 2.400000e+01 : f32
    %35 = vector.broadcast %cst_16 : f32 to vector<1x32xf32>
    %36 = arith.divf %34, %35 : vector<1x32xf32>
    %37 = vector.broadcast %36 : vector<1x32xf32> to vector<24x32xf32>
    %38 = arith.subf %32, %37 : vector<24x32xf32>
    %39 = vector.broadcast %36 : vector<1x32xf32> to vector<24x32xf32>
    %40 = arith.subf %32, %39 : vector<24x32xf32>
    %41 = arith.mulf %38, %40 : vector<24x32xf32>
    %cst_17 = arith.constant dense<0.000000e+00> : vector<32xf32>
    %42 = vector.multi_reduction <add>, %41, %cst_17 [0] : vector<24x32xf32> to vector<32xf32>
    %43 = vector.shape_cast %42 : vector<32xf32> to vector<1x32xf32>
    %cst_18 = arith.constant 2.400000e+01 : f32
    %44 = vector.broadcast %cst_18 : f32 to vector<1x32xf32>
    %45 = arith.divf %43, %44 : vector<1x32xf32>
    %46 = vector.broadcast %36 : vector<1x32xf32> to vector<24x32xf32>
    %47 = arith.subf %32, %46 : vector<24x32xf32>
    %cst_19 = arith.constant 9.99999974E-6 : f32
    %48 = vector.broadcast %cst_19 : f32 to vector<1x32xf32>
    %49 = arith.addf %45, %48 : vector<1x32xf32>
    %50 = math.rsqrt %49 : vector<1x32xf32>
    %51 = vector.broadcast %50 : vector<1x32xf32> to vector<24x32xf32>
    %52 = arith.mulf %47, %51 : vector<24x32xf32>
    %c0_20 = arith.constant 0 : index
    %c0_21 = arith.constant 0 : index
    %53 = vector.load %arg5[%c0_20, %c0_21] : memref<24x32xf32, #tpu.memory_space<vmem>>, vector<24x32xf32>
    tpu.vector_store %arg5[%c0_20, %c0_21], %52 {strides = array<i32>} : memref<24x32xf32, #tpu.memory_space<vmem>>, vector<24x32xf32>,
    return
  }
}

</mosaic_0001>

<bundles_post_ra>
// kernel: tpu_custom_call.1
= control target key start
LH: loop header
LB: loop body
LE: loop exit
PB: predicated region body
PF: predicated region fallthrough
CT: control target
= control target key end

     0   :  { %11 = vsyncpa [#allocation3], 0  ;;  %vm43_vm0 = vcmask 1043456   ;;  %v460_v2 = vmov 0.0|0.0   ;;  %vm461_vm1 = vmmov 1   ;;  %vm462_vm3 = vmmov 0   ;;  %s586_s0 = inlined_call_operand.vmem [shape: f32[24,12], index: 0, kind: input, shape index: {}]   ;;  %s587_s1 = inlined_call_operand.vmem [shape: f32[24,12], index: 1, kind: input, shape index: {}]   ;;  %s588_s2 = inlined_call_operand.vmem [shape: f32[12,32], index: 2, kind: input, shape index: {}]   ;;  %s589_s3 = inlined_call_operand.vmem [shape: f32[1,32], index: 3, kind: input, shape index: {}]   ;;  %s590_s4 = inlined_call_operand.hbm [shape: f32[24,32], index: 4, kind: output, shape index: {0}]   ;;  %s591_s5 = inlined_call_operand.hbm [shape: f32[24,32], index: 5, kind: output, shape index: {1}]  }
   0x1   :  { %v21_v0 = vld [vmem:[%s588_s2] sm:$0xff]  ;;  %v22_v1 = vld [vmem:[%s588_s2 + $0x8] sm:$0xf]  ;;  %380 = vmatprep.subr.bf16.mxu0 %v460_v2  ;;  %384 = vmatprep.subr.bf16.mxu1 %v460_v2  ;;  %vm382_vm2 = vmpackc.low %vm43_vm0, %vm461_vm1  ;;  %v463_v4 = vmov 0.0   ;;  %vm33_vm4 = vcmask 97280  }
   0x2   :  { %v381_v3 = vpack.c.bf16 %v22_v1, %v21_v0  ;;  %358 = vmatprep.mubr.msk.f32.mxu0 %vm462_vm3, %v463_v4  ;;  %371 = vmatprep.mubr.msk.f32.mxu1 %vm462_vm3, %v463_v4  ;;  %v24_v5 = vld [vmem:[%s586_s0] sm:$0xff] }
   0x3   :  { %v170_v6 = vld [vmem:[%s587_s1] sm:$0xff] }
   0x4   :  { %383 = vmatpush3.bf16.msk.msra.mxu0 %vm382_vm2, %v381_v3  ;;  %387 = vmatpush3.bf16.msk.msra.mxu1 %vm382_vm2, %v381_v3 }
   0x5   :  { %12 = vsyncpa [#allocation5], 0  ;;  %v25_v7 = vld [vmem:[%s586_s0 + $0x8] sm:$0xff]  ;;  %v26_v9 = vld [vmem:[%s586_s0 + $0x10] sm:$0xff]  ;;  %vm130_vm5 = vcmask 261120   ;;  %s464_s0 = smov [#allocation2]  }
   0x6   :  { %v171_v8 = vld [vmem:[%s587_s1 + $0x8] sm:$0xff]  ;;  %v172_v10 = vld [vmem:[%s587_s1 + $0x10] sm:$0xff]  ;;  %v335_v11 = vld [vmem:[%s589_s3] ss:$0 sm:$0xff]  ;;  %s308_s1 = sshll.u32 %s464_s0, 4  ;;  %s465_s3 = smov [#allocation4]   ;;  %s309_s1 = int_to_ptr.vmem [resolvable:$true] %s308_s1 }
   0x7   :  { %359 = vmatmul.mubr.msk.f32.vlgmr.msra.gmra.mrb[0].mxu0 %vm33_vm4, %v24_v5  ;;  %372 = vmatmul.mubr.msk.f32.vlgmr.msra.gmra.mrb[0].mxu1 %vm33_vm4, %v170_v6  ;;  %s320_s10 = sshll.u32 %s465_s3, 4  ;;  %s412_s11 = scalar_lea.vmem %s309_s1, 384  ;;  %s549_s10 = int_to_ptr.vmem [resolvable:$true] %s320_s10 }
   0x8   :  { %361 = vmatprep.mubr.msk.f32.mxu0 %vm462_vm3, %v463_v4  ;;  %374 = vmatprep.mubr.msk.f32.mxu1 %vm462_vm3, %v463_v4  ;;  %p413_p0 = scmp.ne.s32.totalorder %s309_s1, %s412_s11  ;;  %p417_p1 = scmp.lt.s32.totalorder %s309_s1, %s309_s1 }
   0x9   :  { %p418_p2 = scmp.lt.s32.totalorder %s412_s11, %s412_s11 }
   0xb   :  { %362 = vmatmul.mubr.msk.f32.gmra.mrb[2].mxu0 %vm33_vm4, %v25_v7  ;;  %375 = vmatmul.mubr.msk.f32.gmra.mrb[2].mxu1 %vm33_vm4, %v171_v8  ;;  %p419_p3 = por %p418_p2, %p417_p1 }
   0xc   :  { %364 = vmatprep.mubr.msk.f32.mxu0 %vm462_vm3, %v463_v4  ;;  %377 = vmatprep.mubr.msk.f32.mxu1 %vm462_vm3, %v463_v4 }
   0xd   :  { %p420_p4 = pnand %p419_p3, %p413_p0 }
   0xf   :  { %365 = vmatmul.mubr.msk.f32.gmra.mrb[4].mxu0 %vm33_vm4, %v26_v9  ;;  %378 = vmatmul.mubr.msk.f32.gmra.mrb[4].mxu1 %vm33_vm4, %v172_v10 }
  0xda   :  { %v113_v12 = vpop.f32.mrb[0].mxu0  ;;  %v248_v13 = vpop.f32.mrb[0].mxu1 }
  0xdb   :  { %v114_v14 = vadd.f32 %v335_v11, %v113_v12  ;;  %v360_v15 = vpop.f32.mrb[1].mxu0  ;;  %v373_v16 = vpop.f32.mrb[1].mxu1  ;;  %v249_v17 = vadd.f32 %v335_v11, %v248_v13 }
  0xdd   :  { %396 = vtanh.f32 %v114_v14 }
  0xde   :  { %v118_v18 = vpop.f32.mrb[2].mxu0  ;;  %v253_v19 = vpop.f32.mrb[2].mxu1  ;;  %398 = vtanh.f32 %v249_v17 }
  0xdf   :  { %v119_v20 = vadd.f32 %v335_v11, %v118_v18  ;;  %v254_v21 = vadd.f32 %v335_v11, %v253_v19  ;;  %v363_v22 = vpop.f32.mrb[3].mxu0  ;;  %v376_v23 = vpop.f32.mrb[3].mxu1 }
  0xe1   :  { %400 = vtanh.f32 %v119_v20 }
  0xe2   :  { %402 = vtanh.f32 %v254_v21  ;;  %v123_v24 = vpop.f32.mrb[4].mxu0  ;;  %v258_v25 = vpop.f32.mrb[4].mxu1 }
  0xe3   :  { %v124_v26 = vadd.f32 %v335_v11, %v123_v24  ;;  %v259_v27 = vadd.f32 %v335_v11, %v258_v25  ;;  %v366_v28 = vpop.f32.mrb[5].mxu0  ;;  %v379_v29 = vpop.f32.mrb[5].mxu1 }
  0xe5   :  { %404 = vtanh.f32 %v124_v26 }
  0xe6   :  { %406 = vtanh.f32 %v259_v27 }
  0xe7   :  { %v397_v30 = vpop.eup %396 }
  0xe8   :  { %v399_v31 = vpop.eup %398  ;;  %v131_v34 = vsel %vm130_vm5, %v397_v30, 0.0 }
  0xe9   :  { %v265_v36 = vsel %vm130_vm5, %v399_v31, 0.0 }
  0xeb   :  { %v401_v32 = vpop.eup %400 }
  0xec   :  { %v403_v33 = vpop.eup %402  ;;  %v132_v35 = vsel %vm130_vm5, %v401_v32, 0.0 }
  0xed   :  { %v133_v37 = vadd.f32 %v132_v35, %v131_v34  ;;  %v266_v38 = vsel %vm130_vm5, %v403_v33, 0.0 }
  0xee   :  { %v267_v39 = vadd.f32 %v266_v38, %v265_v36 }
  0xef   :  { %v405_v40 = vpop.eup %404 }
  0xf0   :  { %v407_v41 = vpop.eup %406  ;;  %v134_v42 = vsel %vm130_vm5, %v405_v40, 0.0 }
  0xf1   :  { %v135_v43 = vadd.f32 %v134_v42, %v133_v37  ;;  %v268_v44 = vsel %vm130_vm5, %v407_v41, 0.0 }
  0xf2   :  { %v269_v45 = vadd.f32 %v268_v44, %v267_v39 }
  0xf3   :  { %v136_v46 = vrot.slane %v135_v43, 4 }
  0xf4   :  { %v270_v47 = vrot.slane %v269_v45, 4 }
  0xf5   :  { %v137_v48 = vadd.f32 %v136_v46, %v135_v43 }
  0xf6   :  { %v271_v49 = vadd.f32 %v270_v47, %v269_v45 }
  0xf7   :  { %v138_v50 = vrot.slane %v137_v48, 2 }
  0xf8   :  { %v272_v51 = vrot.slane %v271_v49, 2 }
  0xf9   :  { %v139_v52 = vadd.f32 %v138_v50, %v137_v48 }
  0xfa   :  { %v273_v53 = vadd.f32 %v272_v51, %v271_v49 }
  0xfb   :  { %v140_v54 = vrot.slane %v139_v52, 1 }
  0xfc   :  { %v274_v55 = vrot.slane %v273_v53, 1 }
  0xfd   :  { %v141_v56 = vadd.f32 %v140_v54, %v139_v52 }
  0xfe   :  { %v275_v57 = vadd.f32 %v274_v55, %v273_v53 }
  0xff   :  { %v143_v58 = vmul.f32 0.041666668, %v141_v56 }
 0x100   :  { %v276_v59 = vmul.f32 0.041666668, %v275_v57 }
 0x101   :  { %v146_v60 = vsub.f32 %v405_v40, %v143_v58  ;;  %v144_v61 = vsub.f32 %v397_v30, %v143_v58  ;;  %v145_v62 = vsub.f32 %v401_v32, %v143_v58 }
 0x102   :  { %v279_v63 = vsub.f32 %v407_v41, %v276_v59  ;;  %v277_v0 = vsub.f32 %v399_v31, %v276_v59  ;;  %v278_v1 = vsub.f32 %v403_v33, %v276_v59 }
 0x103   :  { %v149_v2 = vmul.f32 %v146_v60, %v146_v60  ;;  %v147_v3 = vmul.f32 %v144_v61, %v144_v61  ;;  %v148_v4 = vmul.f32 %v145_v62, %v145_v62 }
 0x104   :  { %v282_v5 = vmul.f32 %v279_v63, %v279_v63  ;;  %v280_v6 = vmul.f32 %v277_v0, %v277_v0  ;;  %v281_v7 = vmul.f32 %v278_v1, %v278_v1 }
 0x105   :  { %v150_v8 = vsel %vm130_vm5, %v147_v3, 0.0  ;;  %v151_v9 = vsel %vm130_vm5, %v148_v4, 0.0  ;;  %v153_v13 = vsel %vm130_vm5, %v149_v2, 0.0 }
 0x106   :  { %v152_v10 = vadd.f32 %v151_v9, %v150_v8  ;;  %v283_v11 = vsel %vm130_vm5, %v280_v6, 0.0  ;;  %v284_v12 = vsel %vm130_vm5, %v281_v7, 0.0  ;;  %v286_v15 = vsel %vm130_vm5, %v282_v5, 0.0 }
 0x107   :  { %v285_v14 = vadd.f32 %v284_v12, %v283_v11 }
 0x108   :  { %v154_v16 = vadd.f32 %v153_v13, %v152_v10 }
 0x109   :  { %v287_v17 = vadd.f32 %v286_v15, %v285_v14 }
 0x10a   :  { %v155_v18 = vrot.slane %v154_v16, 4 }
 0x10b   :  { %v288_v19 = vrot.slane %v287_v17, 4 }
 0x10c   :  { %v156_v20 = vadd.f32 %v155_v18, %v154_v16 }
 0x10d   :  { %v289_v21 = vadd.f32 %v288_v19, %v287_v17 }
 0x10e   :  { %v157_v22 = vrot.slane %v156_v20, 2 }
 0x10f   :  { %v290_v23 = vrot.slane %v289_v21, 2 }
 0x110   :  { %v158_v24 = vadd.f32 %v157_v22, %v156_v20 }
 0x111   :  { %v291_v25 = vadd.f32 %v290_v23, %v289_v21 }
 0x112   :  { %v159_v26 = vrot.slane %v158_v24, 1 }
 0x113   :  { %v292_v27 = vrot.slane %v291_v25, 1 }
 0x114   :  { %v160_v28 = vadd.f32 %v159_v26, %v158_v24 }
 0x115   :  { %v293_v29 = vadd.f32 %v292_v27, %v291_v25 }
 0x116   :  { %v161_v30 = vmul.f32 0.041666668, %v160_v28 }
 0x117   :  { %v294_v31 = vmul.f32 0.041666668, %v293_v29 }
 0x118   :  { %v162_v32 = vadd.f32 1e-05, %v161_v30 }
 0x119   :  { %v295_v33 = vadd.f32 1e-05, %v294_v31 }
 0x11a   :  { %408 = vrsqrt.f32 %v162_v32 }
 0x11b   :  { %410 = vrsqrt.f32 %v295_v33 }
 0x124   :  { %v409_v34 = vpop.eup %408 }
 0x125   :  { %v411_v35 = vpop.eup %410  ;;  %v164_v36 = vmul.f32 %v409_v34, %v144_v61  ;;  %v165_v37 = vmul.f32 %v409_v34, %v145_v62  ;;  %v166_v38 = vmul.f32 %v409_v34, %v146_v60 }
 0x126   :  { %v297_v39 = vmul.f32 %v411_v35, %v277_v0  ;;  %v298_v40 = vmul.f32 %v411_v35, %v278_v1  ;;  %v299_v41 = vmul.f32 %v411_v35, %v279_v63 }
 0x127   :  { %167 = vst.msk [vmem:[#allocation2] sm:$0xff] %vm130_vm5, %v164_v36  ;;  %168 = vst.msk [vmem:[#allocation2 + $0x8] sm:$0xff] %vm130_vm5, %v165_v37 }
 0x128   :  { %169 = vst.msk [vmem:[#allocation2 + $0x10] sm:$0xff] %vm130_vm5, %v166_v38 }
 0x129   :  { %423 = shalt.err (!%p420_p4)
}
 0x12a   :  { %s424_s14 = scalar_lea.hbm %s590_s4, 384 }
 0x12b   :  { %p425_p5 = scmp.ne.s32.totalorder %s590_s4, %s424_s14  ;;  %p428_p6 = scmp.lt.u32.totalorder %s424_s14, %s590_s4 }
 0x12d   :  { %p430_p7 = pnand %p428_p6, %p425_p5 }
 0x12f   :  { %433 = shalt.err (!%p430_p7)
}
 0x130   :  { %s466_s19 = smov 128   ;;  %s467_s20 = smov 8   ;;  %300 = vst.msk [vmem:[#allocation4] sm:$0xff] %vm130_vm5, %v297_v39  ;;  %301 = vst.msk [vmem:[#allocation4 + $0x8] sm:$0xff] %vm130_vm5, %v298_v40 }
 0x131   :  { %314 = dma.vmem_to_hbm [thread:$0]  %s309_s1, 384, %s590_s4, [#allocation3], %s466_s19, %s466_s19, %s467_s20   ;;  %302 = vst.msk [vmem:[#allocation4 + $0x10] sm:$0xff] %vm130_vm5, %v299_v41 }
 0x132   :  { %s434_s23 = scalar_lea.vmem %s549_s10, 384  ;;  %p439_p9 = scmp.lt.s32.totalorder %s549_s10, %s549_s10 }
 0x133   :  { %p435_p8 = scmp.ne.s32.totalorder %s549_s10, %s434_s23  ;;  %p440_p10 = scmp.lt.s32.totalorder %s434_s23, %s434_s23 }
 0x135   :  { %p441_p11 = por %p440_p10, %p439_p9 }
 0x137   :  { %p442_p12 = pnand %p441_p11, %p435_p8 }
 0x139   :  { %445 = shalt.err (!%p442_p12)
}
 0x13a   :  { %s446_s25 = scalar_lea.hbm %s591_s5, 384 }
 0x13b   :  { %p447_p13 = scmp.ne.s32.totalorder %s591_s5, %s446_s25  ;;  %p450_p0 = scmp.lt.u32.totalorder %s446_s25, %s591_s5 }
 0x13d   :  { %p452_p1 = pnand %p450_p0, %p447_p13 }
 0x13f   :  { %455 = shalt.err (!%p452_p1)
}
 0x140   :  { %326 = dma.vmem_to_hbm [thread:$0]  %s549_s10, 384, %s591_s5, [#allocation5], %s466_s19, %s466_s19, %s467_s20  }
 0x141   :  { %456 = dma.done.wait [#allocation3], 384  }
 0x142   :  { %457 = vsyncadd [#allocation3], 4294966912 }
 0x143   :  { %458 = dma.done.wait [#allocation5], 384  }
 0x144   :  { %459 = vsyncadd [#allocation5], 4294966912 }
 0x145   :  { %333 = vsyncpa [#allocation3], 1 }
 0x146   :  { %334 = vsyncpa [#allocation5], 1 }

</bundles_post_ra>
